<compile_context>
chip_gen: v7x
topology: tpu7x:2x2x1
jax: 0.10.0
libtpu: 0.0.40
codegen_flags: <defaults>
</compile_context>

<pallas_src>
import jax
import jax.numpy as jnp
from jax.experimental import pallas as pl
from jax.experimental.pallas import tpu as pltpu


def patch_encoder_kernel(x_ref, w_ref, pe_ref, o_ref):
    # x_ref : (B*N, Din)  flattened patches                      (VMEM)
    # w_ref : (Din, D)    pre-transposed Linear weight           (VMEM)
    # pe_ref: (N, D)      pos_embed + bias (bias pre-folded)     (VMEM)
    # o_ref : (B*N, D)
    y = jnp.dot(x_ref[...], w_ref[...],
                preferred_element_type=jnp.float32)        # single MXU pass
    bn, d = o_ref.shape
    n = pe_ref.shape[0]
    b = bn // n
    pe = pe_ref[...]
    pe_full = jnp.concatenate([pe] * b, axis=0) if b > 1 else pe  # sublane copy
    o_ref[...] = (y + pe_full).astype(o_ref.dtype)         # one VPU add


def prepare_params(weight, bias, pos_embed):
    """One-time parameter prep (hoisted off the per-call path).

    weight:    (D, Din)  PyTorch nn.Linear layout
    bias:      (D,)
    pos_embed: (1, N, D)
    Returns (w_t: (Din, D), pe_bias: (N, D)).  Batch-size independent.
    """
    w_t = weight.T                                  # (Din, D)
    pe_bias = pos_embed[0] + bias[None, :]          # (N, D) bias folded in
    return w_t, pe_bias


def patch_encoder(x, w_t, pe_bias):
    """x: (B, N, Din); w_t: (Din, D); pe_bias: (N, D). Returns (B, N, D)."""
    B, N, Din = x.shape
    K, D = w_t.shape
    assert K == Din and pe_bias.shape == (N, D)
    BN = B * N

    x_flat = x.reshape(BN, Din)                     # free (contiguous)

    flops = 2 * BN * K * D
    bytes_accessed = (BN * K + K * D + N * D + BN * D) * 4

    out = pl.pallas_call(
        patch_encoder_kernel,
        out_shape=jax.ShapeDtypeStruct((BN, D), x.dtype),
        # Single program, no grid: whole (tiny, ~10 KiB) operands live in VMEM.
        in_specs=[
            pl.BlockSpec(memory_space=pltpu.MemorySpace.VMEM),
            pl.BlockSpec(memory_space=pltpu.MemorySpace.VMEM),
            pl.BlockSpec(memory_space=pltpu.MemorySpace.VMEM),
        ],
        out_specs=pl.BlockSpec(memory_space=pltpu.MemorySpace.VMEM),
        cost_estimate=pl.CostEstimate(flops=flops,
                                      bytes_accessed=bytes_accessed,
                                      transcendentals=0),
    )(x_flat, w_t, pe_bias)

    return out.reshape(B, N, D)                     # free (contiguous)


def reference(x, weight, bias, pos_embed):
    return jnp.einsum("bni,di->bnd", x, weight) + bias[None, None, :] + pos_embed


if __name__ == "__main__":
    # Shapes implied by the module: patch_size=6 -> Din = 6*6*3 = 108.
    B = 2
    num_patches = 8
    projection_dim = 32
    Din = 6 * 6 * 3  # 108

    key = jax.random.PRNGKey(0)
    kx, kw, kb, kp = jax.random.split(key, 4)

    # Deterministic parameter init (Linear weight/bias + pos_embed ~ randn).
    bound = 1.0 / (Din ** 0.5)
    weight = jax.random.uniform(kw, (projection_dim, Din),
                                minval=-bound, maxval=bound,
                                dtype=jnp.float32)          # (D, Din) PyTorch layout
    bias = jax.random.uniform(kb, (projection_dim,),
                              minval=-bound, maxval=bound, dtype=jnp.float32)
    pos_embed = jax.random.normal(kp, (1, num_patches, projection_dim),
                                  dtype=jnp.float32)
    x = jax.random.normal(kx, (B, num_patches, Din), dtype=jnp.float32)

    # One-time parameter prep (transpose + bias fold), off the hot path.
    w_t, pe_bias = jax.block_until_ready(prepare_params(weight, bias, pos_embed))

    fwd = jax.jit(patch_encoder)
    out = jax.block_until_ready(fwd(x, w_t, pe_bias))

    ref = reference(x, weight, bias, pos_embed)
    assert out.shape == (B, num_patches, projection_dim)
    assert jnp.allclose(out, ref, atol=1e-5, rtol=1e-5), "mismatch vs reference"

    # TODO(synk): QuantStub/DeQuantStub are identity in float mode; true int8
    # fake-quantization is not modeled here.
    print("KERNEL_OK")
</pallas_src>

<mosaic_0001>
module attributes {stable_mosaic.version = 11 : i64} {
  func.func @patch_encoder_kernel(%arg0: memref<16x108xf32, #tpu.memory_space<vmem>>, %arg1: memref<108x32xf32, #tpu.memory_space<vmem>>, %arg2: memref<8x32xf32, #tpu.memory_space<vmem>>, %arg3: memref<16x32xf32, #tpu.memory_space<vmem>>) attributes {dimension_semantics = [], scalar_prefetch = 0 : i64, scratch_operands = 0 : i64, tpu.core_type = #tpu.core_type<tc>} {
    %c0 = arith.constant 0 : index
    %c0_0 = arith.constant 0 : index
    %0 = vector.load %arg0[%c0, %c0_0] : memref<16x108xf32, #tpu.memory_space<vmem>>, vector<16x108xf32>
    %c0_1 = arith.constant 0 : index
    %c0_2 = arith.constant 0 : index
    %1 = vector.load %arg1[%c0_1, %c0_2] : memref<108x32xf32, #tpu.memory_space<vmem>>, vector<108x32xf32>
    %cst = arith.constant dense<0.000000e+00> : vector<16x32xf32>
    %2 = tpu.matmul %0, %1, %cst {dimension_numbers = #tpu.dot_dimension_numbers<[1], [0], [0], [1], [0, 0, 1, 1], [], []>} : vector<16x108xf32>, vector<108x32xf32>, vector<16x32xf32> -> vector<16x32xf32>
    %c0_3 = arith.constant 0 : index
    %c0_4 = arith.constant 0 : index
    %3 = vector.load %arg2[%c0_3, %c0_4] : memref<8x32xf32, #tpu.memory_space<vmem>>, vector<8x32xf32>
    %4 = tpu.concatenate %3, %3 in 0 : vector<8x32xf32>, vector<8x32xf32> -> vector<16x32xf32>
    %5 = arith.addf %2, %4 : vector<16x32xf32>
    %c0_5 = arith.constant 0 : index
    %c0_6 = arith.constant 0 : index
    %6 = vector.load %arg3[%c0_5, %c0_6] : memref<16x32xf32, #tpu.memory_space<vmem>>, vector<16x32xf32>
    tpu.vector_store %arg3[%c0_5, %c0_6], %5 {strides = array<i32>} : memref<16x32xf32, #tpu.memory_space<vmem>>, vector<16x32xf32>,
    return
  }
}

</mosaic_0001>

<bundles_post_ra>
// kernel: patch_encoder.1
= control target key start
LH: loop header
LB: loop body
LE: loop exit
PB: predicated region body
PF: predicated region fallthrough
CT: control target
= control target key end

     0   :  { %vm32_vm0 = vcmask 883712   ;;  %s334_s0 = inlined_call_operand.vmem [shape: f32[16,108], index: 0, kind: input, shape index: {}]   ;;  %s335_s1 = inlined_call_operand.vmem [shape: f32[108,32], index: 1, kind: input, shape index: {}]   ;;  %s336_s2 = inlined_call_operand.vmem [shape: f32[8,32], index: 2, kind: input, shape index: {}]   ;;  %s337_s3 = inlined_call_operand.hbm [shape: f32[16,32], index: 3, kind: output, shape index: {}]  }
   0x1   :  { %v17_v0 = vld [vmem:[%s335_s1] sm:$0xff]  ;;  %v18_v1 = vld [vmem:[%s335_s1 + $0x8] sm:$0xff]  ;;  %v19_v2 = vld [vmem:[%s335_s1 + $0x10] sm:$0xff] }
   0x2   :  { %v187_v3 = vpack.c.bf16 %v18_v1, %v17_v0  ;;  %v20_v4 = vld [vmem:[%s335_s1 + $0x18] sm:$0xff]  ;;  %v21_v6 = vld [vmem:[%s335_s1 + $0x20] sm:$0xff]  ;;  %v22_v7 = vld [vmem:[%s335_s1 + $0x28] sm:$0xff] }
   0x3   :  { %v191_v5 = vpack.c.bf16 %v20_v4, %v19_v2  ;;  %v195_v8 = vpack.c.bf16 %v22_v7, %v21_v6  ;;  %v15_v9 = vld [vmem:[%s334_s0] sm:$0xff] }
   0x4   :  { %188 = vmatprep.subr.bf16.mxu0 %v187_v3 }
   0x5   :  { %190 = vmatpush3.bf16.msra.mxu0 %v187_v3 }
   0x6   :  { %192 = vmatprep.subr.bf16.mxu0 %v191_v5 }
   0x7   :  { %8 = vsyncpa [#allocation3], 0  ;;  %v23_v10 = vld [vmem:[%s335_s1 + $0x30] sm:$0xff]  ;;  %v24_v11 = vld [vmem:[%s335_s1 + $0x38] sm:$0xff]  ;;  %184 = vmatprep.mubr.msk.f32.mxu0 %vm32_vm0, %v15_v9  ;;  %vm39_vm1 = vcmask 1043456   ;;  %vm245_vm2 = vmmov 1  }
   0x8   :  { %v199_v12 = vpack.c.bf16 %v24_v11, %v23_v10  ;;  %v25_v13 = vld [vmem:[%s335_s1 + $0x40] sm:$0xff]  ;;  %v26_v14 = vld [vmem:[%s335_s1 + $0x48] sm:$0xff]  ;;  %v27_v16 = vld [vmem:[%s335_s1 + $0x50] sm:$0xff]  ;;  %vm118_vm4 = vcmask 261120  }
   0x9   :  { %194 = vmatpush3.bf16.msra.mxu0 %v191_v5  ;;  %v203_v15 = vpack.c.bf16 %v26_v14, %v25_v13  ;;  %v28_v17 = vld [vmem:[%s335_s1 + $0x58] sm:$0xff]  ;;  %v29_v19 = vld [vmem:[%s335_s1 + $0x60] sm:$0xff]  ;;  %v30_v20 = vld [vmem:[%s335_s1 + $0x68] sm:$0xf]  ;;  %s246_s1 = smov [#allocation2]  }
   0xa   :  { %196 = vmatprep.subr.bf16.mxu0 %v195_v8  ;;  %v207_v18 = vpack.c.bf16 %v28_v17, %v27_v16  ;;  %v211_v21 = vpack.c.bf16 %v30_v20, %v29_v19  ;;  %vm212_vm3 = vmpackc.low %vm39_vm1, %vm245_vm2  ;;  %v16_v22 = vld [vmem:[%s334_s0 + $0x8] sm:$0xff]  ;;  %v31_v23 = vld [vmem:[%s336_s2] sm:$0xff]  ;;  %s126_s19 = sshll.u32 %s246_s1, 4  ;;  %s127_s19 = int_to_ptr.vmem [resolvable:$true] %s126_s19 }
   0xb   :  { %s221_s20 = scalar_lea.vmem %s127_s19, 256  ;;  %p226_p1 = scmp.lt.s32.totalorder %s127_s19, %s127_s19 }
   0xc   :  { %p222_p0 = scmp.ne.s32.totalorder %s127_s19, %s221_s20  ;;  %p227_p2 = scmp.lt.s32.totalorder %s221_s20, %s221_s20 }
   0xd   :  { %198 = vmatpush3.bf16.msra.mxu0 %v195_v8 }
   0xe   :  { %200 = vmatprep.subr.bf16.mxu0 %v199_v12  ;;  %p228_p3 = por %p227_p2, %p226_p1 }
  0x10   :  { %p229_p4 = pnand %p228_p3, %p222_p0 }
  0x11   :  { %202 = vmatpush3.bf16.msra.mxu0 %v199_v12 }
  0x12   :  { %204 = vmatprep.subr.bf16.mxu0 %v203_v15 }
  0x15   :  { %206 = vmatpush3.bf16.msra.mxu0 %v203_v15 }
  0x16   :  { %208 = vmatprep.subr.bf16.mxu0 %v207_v18 }
  0x19   :  { %210 = vmatpush3.bf16.msra.mxu0 %v207_v18 }
  0x1a   :  { %213 = vmatprep.subr.msk.bf16.mxu0 %vm212_vm3, %v211_v21 }
  0x1d   :  { %216 = vmatpush3.bf16.msk.msra.mxu0 %vm212_vm3, %v211_v21 }
  0x20   :  { %185 = vmatmul.mubr.msk.f32.vlgmr.msra.gmra.mrb[0].mxu0 %vm32_vm0, %v16_v22 }
  0xf3   :  { %v186_v24 = vpop.f32.mrb[0].mxu0 }
  0xf4   :  { %v115_v25 = vadd.f32 %v186_v24, %v31_v23  ;;  %v109_v26 = vpop.f32.mrb[1].mxu0 }
  0xf5   :  { %v110_v27 = vadd.f32 %v109_v26, %v31_v23 }
  0xf6   :  { %120 = vst.msk [vmem:[#allocation2 + $0x8] sm:$0xff] %vm118_vm4, %v115_v25 }
  0xf7   :  { %119 = vst.msk [vmem:[#allocation2] sm:$0xff] %vm118_vm4, %v110_v27 }
  0xf8   :  { %232 = shalt.err (!%p229_p4)
}
  0xf9   :  { %s233_s2 = scalar_lea.hbm %s337_s3, 256 }
  0xfa   :  { %p234_p5 = scmp.ne.s32.totalorder %s337_s3, %s233_s2  ;;  %p237_p6 = scmp.lt.u32.totalorder %s233_s2, %s337_s3 }
  0xfc   :  { %p239_p7 = pnand %p237_p6, %p234_p5 }
  0xfe   :  { %242 = shalt.err (!%p239_p7)
}
  0xff   :  { %s247_s26 = smov 128   ;;  %s248_s27 = smov 8  }
 0x100   :  { %132 = dma.vmem_to_hbm [thread:$0]  %s127_s19, 256, %s337_s3, [#allocation3], %s247_s26, %s247_s26, %s248_s27  }
 0x101   :  { %243 = dma.done.wait [#allocation3], 256  }
 0x102   :  { %244 = vsyncadd [#allocation3], 4294967040 }
 0x103   :  { %136 = vsyncpa [#allocation3], 1 }

</bundles_post_ra>
